<compile_context>
chip_gen: v6e
topology: v6e:2x2x1
jax: 0.10.0
libtpu: 0.0.40
codegen_flags: <defaults>
</compile_context>

<pallas_src>
import jax
import jax.numpy as jnp
import numpy as np
from jax.experimental import pallas as pl
from jax.experimental.pallas import tpu as pltpu


def qnetwork_kernel(x_ref, w1_ref, b1_ref, w2_ref, b2_ref, w3_ref, b3_ref, o_ref):
    """Fused 3-layer MLP: relu(x@W1+b1) -> relu(.@W2+b2) -> .@W3+b3.

    Weights arrive as bf16; dots accumulate in f32; bias/ReLU stay f32.
    """
    x = x_ref[...].astype(jnp.bfloat16)
    h1 = jnp.dot(x, w1_ref[...], preferred_element_type=jnp.float32) + b1_ref[...]
    h1 = jnp.maximum(h1, 0.0)
    h2 = (jnp.dot(h1.astype(jnp.bfloat16), w2_ref[...],
                  preferred_element_type=jnp.float32) + b2_ref[...])
    h2 = jnp.maximum(h2, 0.0)
    out = (jnp.dot(h2.astype(jnp.bfloat16), w3_ref[...],
                   preferred_element_type=jnp.float32) + b3_ref[...])
    o_ref[...] = out.astype(o_ref.dtype)


def _tensorcores_per_device():
    """Best-effort TensorCores-per-device count (gates the forced batch split)."""
    try:
        kind = jax.devices()[0].device_kind.lower()
    except Exception:
        return 1
    # Single-TC parts: v2/v3 (one core per device), v5e ("v5 lite"/"v5e"), v6e.
    if "lite" in kind or "v5e" in kind or "v6" in kind or "v2" in kind or "v3" in kind:
        return 1
    # Dual-TC / megacore parts: v4, v5p, v7x.
    if "v4" in kind or "v5p" in kind or "v5" in kind or "v7" in kind or "7x" in kind:
        return 2
    return 1


def _pick_tile(B, tb, num_tc):
    """Batch tile: <=B, multiple of 8, capped at 2048 (keeps f32 h1/h2
    intermediates + double-buffered x/out under the default scoped VMEM limit).
    Only force >=2 grid steps when the device has 2 TensorCores to shard onto."""
    tb = min(tb, B, 2048)
    if num_tc >= 2 and tb == B and B >= 16:
        tb = -(-B // 2)
    if tb < B:
        tb = max(8, (tb // 8) * 8)
    return tb


def prepare_qnetwork_params(params):
    """One-time parameter prep (call once per parameter update, NOT per forward):
    bf16 weights in (in_features, out_features) layout, f32 row-vector biases."""
    w1, b1, w2, b2, w3, b3 = params
    return (
        w1.astype(jnp.bfloat16), b1.reshape(1, -1).astype(jnp.float32),
        w2.astype(jnp.bfloat16), b2.reshape(1, -1).astype(jnp.float32),
        w3.astype(jnp.bfloat16), b3.reshape(1, -1).astype(jnp.float32),
    )


def qnetwork_forward(x, prepared, *, tb=1024):
    """x: (B, state_size) f32; prepared: output of prepare_qnetwork_params.
    Returns (B, action_size) f32 Q-values."""
    w1b, b1r, w2b, b2r, w3b, b3r = prepared
    B, S = x.shape
    H = w1b.shape[1]
    A = w3b.shape[1]

    tb = _pick_tile(B, tb, _tensorcores_per_device())
    grid = (pl.cdiv(B, tb),)
    full = lambda shape: pl.BlockSpec(shape, lambda i: (0, 0))

    return pl.pallas_call(
        qnetwork_kernel,
        out_shape=jax.ShapeDtypeStruct((B, A), jnp.float32),
        grid_spec=pltpu.PrefetchScalarGridSpec(
            num_scalar_prefetch=0,
            grid=grid,
            in_specs=[
                pl.BlockSpec((tb, S), lambda i: (i, 0)),   # x tile over batch
                full((S, H)), full((1, H)),                # fc1 (bf16 W, f32 b)
                full((H, H)), full((1, H)),                # fc2
                full((H, A)), full((1, A)),                # fc3 (unpadded N=A)
            ],
            out_specs=pl.BlockSpec((tb, A), lambda i: (i, 0)),
        ),
        compiler_params=pltpu.CompilerParams(
            dimension_semantics=("parallel",),
        ),
    )(x, w1b, b1r, w2b, b2r, w3b, b3r)


def init_qnetwork_params(key, state_size, action_size, hidden=512):
    """Deterministic init mimicking nn.Linear default: U(-1/sqrt(fan_in), +1/sqrt(fan_in))."""
    ks = jax.random.split(key, 6)

    def linear(kw, kb, fan_in, fan_out):
        bound = 1.0 / np.sqrt(fan_in)
        w = jax.random.uniform(kw, (fan_in, fan_out), jnp.float32, -bound, bound)
        b = jax.random.uniform(kb, (fan_out,), jnp.float32, -bound, bound)
        return w, b

    w1, b1 = linear(ks[0], ks[1], state_size, hidden)
    w2, b2 = linear(ks[2], ks[3], hidden, hidden)
    w3, b3 = linear(ks[4], ks[5], hidden, action_size)
    return (w1, b1, w2, b2, w3, b3)


if __name__ == "__main__":
    state_size = 32
    action_size = 8
    batch = 64

    key = jax.random.PRNGKey(0)
    k_param, k_x = jax.random.split(key)
    params = init_qnetwork_params(k_param, state_size, action_size)
    prepared = prepare_qnetwork_params(params)   # hoisted one-time weight prep
    x = jax.random.normal(k_x, (batch, state_size), jnp.float32)

    fwd = jax.jit(qnetwork_forward)
    out = jax.block_until_ready(fwd(x, prepared))

    # reference 1: same bf16-weight / f32-accumulate recipe (tight tolerance)
    w1, b1, w2, b2, w3, b3 = params
    w1b, w2b, w3b = (w.astype(jnp.bfloat16) for w in (w1, w2, w3))
    h = jnp.maximum(jnp.dot(x.astype(jnp.bfloat16), w1b,
                            preferred_element_type=jnp.float32) + b1, 0.0)
    h = jnp.maximum(jnp.dot(h.astype(jnp.bfloat16), w2b,
                            preferred_element_type=jnp.float32) + b2, 0.0)
    ref_bf16 = jnp.dot(h.astype(jnp.bfloat16), w3b,
                       preferred_element_type=jnp.float32) + b3
    np.testing.assert_allclose(np.asarray(out), np.asarray(ref_bf16),
                               rtol=1e-4, atol=1e-4)

    # reference 2: exact f32 QNetwork math (documents bf16-weight drift; loose)
    h32 = jnp.maximum(x @ w1 + b1, 0.0)
    h32 = jnp.maximum(h32 @ w2 + b2, 0.0)
    ref_f32 = h32 @ w3 + b3
    np.testing.assert_allclose(np.asarray(out), np.asarray(ref_f32),
                               rtol=0.0, atol=0.1)

    print("KERNEL_OK")
</pallas_src>

<mosaic_0001>
module attributes {stable_mosaic.version = 11 : i64} {
  func.func @qnetwork_kernel(%arg0: i32, %arg1: memref<64x32xf32, #tpu.memory_space<vmem>>, %arg2: memref<32x512xbf16, #tpu.memory_space<vmem>>, %arg3: memref<1x512xf32, #tpu.memory_space<vmem>>, %arg4: memref<512x512xbf16, #tpu.memory_space<vmem>>, %arg5: memref<1x512xf32, #tpu.memory_space<vmem>>, %arg6: memref<512x8xbf16, #tpu.memory_space<vmem>>, %arg7: memref<1x8xf32, #tpu.memory_space<vmem>>, %arg8: memref<64x8xf32, #tpu.memory_space<vmem>>) attributes {dimension_semantics = [#tpu.dimension_semantics<parallel>], iteration_bounds = array<i64: 1>, scalar_prefetch = 0 : i64, scratch_operands = 0 : i64, tpu.core_type = #tpu.core_type<tc>, window_params = [{transform_indices = @transform_0, window_bounds = array<i64: 64, 32>}, {pipeline_mode = #tpu.pipeline_mode<synchronous>, transform_indices = @transform_1, window_bounds = array<i64: 32, 512>}, {pipeline_mode = #tpu.pipeline_mode<synchronous>, transform_indices = @transform_2, window_bounds = array<i64: 1, 512>}, {pipeline_mode = #tpu.pipeline_mode<synchronous>, transform_indices = @transform_3, window_bounds = array<i64: 512, 512>}, {pipeline_mode = #tpu.pipeline_mode<synchronous>, transform_indices = @transform_4, window_bounds = array<i64: 1, 512>}, {pipeline_mode = #tpu.pipeline_mode<synchronous>, transform_indices = @transform_5, window_bounds = array<i64: 512, 8>}, {pipeline_mode = #tpu.pipeline_mode<synchronous>, transform_indices = @transform_6, window_bounds = array<i64: 1, 8>}, {transform_indices = @transform_7, window_bounds = array<i64: 64, 8>}]} {
    %c0 = arith.constant 0 : index
    %c0_0 = arith.constant 0 : index
    %0 = vector.load %arg1[%c0, %c0_0] : memref<64x32xf32, #tpu.memory_space<vmem>>, vector<64x32xf32>
    %1 = arith.truncf %0 : vector<64x32xf32> to vector<64x32xbf16>
    %c0_1 = arith.constant 0 : index
    %c0_2 = arith.constant 0 : index
    %2 = vector.load %arg2[%c0_1, %c0_2] : memref<32x512xbf16, #tpu.memory_space<vmem>>, vector<32x512xbf16>
    %cst = arith.constant dense<0.000000e+00> : vector<64x512xf32>
    %3 = tpu.matmul %1, %2, %cst {dimension_numbers = #tpu.dot_dimension_numbers<[1], [0], [0], [1], [0, 0, 1, 1], [], []>} : vector<64x32xbf16>, vector<32x512xbf16>, vector<64x512xf32> -> vector<64x512xf32>
    %c0_3 = arith.constant 0 : index
    %c0_4 = arith.constant 0 : index
    %4 = vector.load %arg3[%c0_3, %c0_4] : memref<1x512xf32, #tpu.memory_space<vmem>>, vector<1x512xf32>
    %5 = vector.broadcast %4 : vector<1x512xf32> to vector<64x512xf32>
    %6 = arith.addf %3, %5 : vector<64x512xf32>
    %cst_5 = arith.constant 0.000000e+00 : f32
    %7 = vector.broadcast %cst_5 : f32 to vector<64x512xf32>
    %8 = arith.maximumf %6, %7 : vector<64x512xf32>
    %9 = arith.truncf %8 : vector<64x512xf32> to vector<64x512xbf16>
    %c0_6 = arith.constant 0 : index
    %c0_7 = arith.constant 0 : index
    %10 = vector.load %arg4[%c0_6, %c0_7] : memref<512x512xbf16, #tpu.memory_space<vmem>>, vector<512x512xbf16>
    %cst_8 = arith.constant dense<0.000000e+00> : vector<64x512xf32>
    %11 = tpu.matmul %9, %10, %cst_8 {dimension_numbers = #tpu.dot_dimension_numbers<[1], [0], [0], [1], [0, 0, 1, 1], [], []>} : vector<64x512xbf16>, vector<512x512xbf16>, vector<64x512xf32> -> vector<64x512xf32>
    %c0_9 = arith.constant 0 : index
    %c0_10 = arith.constant 0 : index
    %12 = vector.load %arg5[%c0_9, %c0_10] : memref<1x512xf32, #tpu.memory_space<vmem>>, vector<1x512xf32>
    %13 = vector.broadcast %12 : vector<1x512xf32> to vector<64x512xf32>
    %14 = arith.addf %11, %13 : vector<64x512xf32>
    %cst_11 = arith.constant 0.000000e+00 : f32
    %15 = vector.broadcast %cst_11 : f32 to vector<64x512xf32>
    %16 = arith.maximumf %14, %15 : vector<64x512xf32>
    %17 = arith.truncf %16 : vector<64x512xf32> to vector<64x512xbf16>
    %c0_12 = arith.constant 0 : index
    %c0_13 = arith.constant 0 : index
    %18 = vector.load %arg6[%c0_12, %c0_13] : memref<512x8xbf16, #tpu.memory_space<vmem>>, vector<512x8xbf16>
    %cst_14 = arith.constant dense<0.000000e+00> : vector<64x8xf32>
    %19 = tpu.matmul %17, %18, %cst_14 {dimension_numbers = #tpu.dot_dimension_numbers<[1], [0], [0], [1], [0, 0, 1, 1], [], []>} : vector<64x512xbf16>, vector<512x8xbf16>, vector<64x8xf32> -> vector<64x8xf32>
    %c0_15 = arith.constant 0 : index
    %c0_16 = arith.constant 0 : index
    %20 = vector.load %arg7[%c0_15, %c0_16] : memref<1x8xf32, #tpu.memory_space<vmem>>, vector<1x8xf32>
    %21 = vector.broadcast %20 : vector<1x8xf32> to vector<64x8xf32>
    %22 = arith.addf %19, %21 : vector<64x8xf32>
    %c0_17 = arith.constant 0 : index
    %c0_18 = arith.constant 0 : index
    %23 = vector.load %arg8[%c0_17, %c0_18] : memref<64x8xf32, #tpu.memory_space<vmem>>, vector<64x8xf32>
    tpu.vector_store %arg8[%c0_17, %c0_18], %22 {strides = array<i32>} : memref<64x8xf32, #tpu.memory_space<vmem>>, vector<64x8xf32>,
    return
  }
  func.func @transform_0(%arg0: i32) -> (i32, i32) {
    %c0_i32 = arith.constant 0 : i32
    %c0_i32_0 = arith.constant 0 : i32
    return %arg0, %c0_i32 : i32, i32
  }
  func.func @transform_1(%arg0: i32) -> (i32, i32) {
    %c0_i32 = arith.constant 0 : i32
    %c0_i32_0 = arith.constant 0 : i32
    %c0_i32_1 = arith.constant 0 : i32
    return %c0_i32, %c0_i32_0 : i32, i32
  }
  func.func @transform_2(%arg0: i32) -> (i32, i32) {
    %c0_i32 = arith.constant 0 : i32
    %c0_i32_0 = arith.constant 0 : i32
    %c0_i32_1 = arith.constant 0 : i32
    return %c0_i32, %c0_i32_0 : i32, i32
  }
  func.func @transform_3(%arg0: i32) -> (i32, i32) {
    %c0_i32 = arith.constant 0 : i32
    %c0_i32_0 = arith.constant 0 : i32
    %c0_i32_1 = arith.constant 0 : i32
    return %c0_i32, %c0_i32_0 : i32, i32
  }
  func.func @transform_4(%arg0: i32) -> (i32, i32) {
    %c0_i32 = arith.constant 0 : i32
    %c0_i32_0 = arith.constant 0 : i32
    %c0_i32_1 = arith.constant 0 : i32
    return %c0_i32, %c0_i32_0 : i32, i32
  }
  func.func @transform_5(%arg0: i32) -> (i32, i32) {
    %c0_i32 = arith.constant 0 : i32
    %c0_i32_0 = arith.constant 0 : i32
    %c0_i32_1 = arith.constant 0 : i32
    return %c0_i32, %c0_i32_0 : i32, i32
  }
  func.func @transform_6(%arg0: i32) -> (i32, i32) {
    %c0_i32 = arith.constant 0 : i32
    %c0_i32_0 = arith.constant 0 : i32
    %c0_i32_1 = arith.constant 0 : i32
    return %c0_i32, %c0_i32_0 : i32, i32
  }
  func.func @transform_7(%arg0: i32) -> (i32, i32) {
    %c0_i32 = arith.constant 0 : i32
    %c0_i32_0 = arith.constant 0 : i32
    return %arg0, %c0_i32 : i32, i32
  }
}

</mosaic_0001>

<bundles_post_ra>
// kernel: qnetwork_forward.1
= control target key start
LH: loop header
LB: loop body
LE: loop exit
PB: predicated region body
PF: predicated region fallthrough
CT: control target
= control target key end

     0   :  { %12 = vsyncpa [#allocation3], 0  ;;  %s2386_s24 = smov [#allocation2]   ;;  %s2806_s0 = inlined_call_operand.vmem [shape: f32[64,32], index: 0, kind: input, shape index: {}]   ;;  %s2807_s1 = inlined_call_operand.vmem [shape: bf16[32,512], index: 1, kind: input, shape index: {}]   ;;  %s2808_s2 = inlined_call_operand.vmem [shape: f32[1,512], index: 2, kind: input, shape index: {}]   ;;  %s2809_s3 = inlined_call_operand.hbm [shape: bf16[512,512], index: 3, kind: input, shape index: {}]   ;;  %s2810_s4 = inlined_call_operand.vmem [shape: f32[1,512], index: 4, kind: input, shape index: {}]   ;;  %s2811_s5 = inlined_call_operand.vmem [shape: bf16[512,8], index: 5, kind: input, shape index: {}]   ;;  %s2812_s6 = inlined_call_operand.vmem [shape: f32[1,8], index: 6, kind: input, shape index: {}]   ;;  %s2813_s7 = inlined_call_operand.vmem [shape: f32[64,8], index: 7, kind: output, shape index: {}]  }
   0x1   :  { %s24_s25 = sshll.u32 %s2386_s24, 4  ;;  %s25_s25 = int_to_ptr.vmem [resolvable:$true] %s24_s25 }
   0x2   :  { %s2372_s26 = scalar_lea.vmem %s25_s25, 16384  ;;  %p2377_p1 = scmp.lt.s32.totalorder %s25_s25, %s25_s25 }
   0x3   :  { %p2373_p0 = scmp.ne.s32.totalorder %s25_s25, %s2372_s26  ;;  %p2378_p2 = scmp.lt.s32.totalorder %s2372_s26, %s2372_s26 }
   0x5   :  { %p2379_p3 = por %p2378_p2, %p2377_p1 }
   0x7   :  { %p2380_p4 = pnand %p2379_p3, %p2373_p0 }
   0x9   :  { %2383 = shalt.err (!%p2380_p4)
}
   0xa   :  { %s2387_s27 = smov 256   ;;  %s2388_s28 = smov 16  }
   0xb   :  { %30 = dma.hbm_to_vmem [thread:$0]  %s2809_s3, 16384, %s25_s25, [#allocation3], %s2387_s27, %s2387_s27, %s2388_s28  }
   0xc   :  { %2384 = dma.done.wait [#allocation3], 16384  }
   0xd   :  { %2385 = vsyncadd [#allocation3], 4294950912  ;;  %v2389_v0 = vmov 0   ;;  %v2128_v1 = vld [vmem:[%s2807_s1 + $0x24] ss:$16 sps:$4 sm:$0xff]   ;;  %v42_v10 = vld [vmem:[%s2806_s0 + $0x8] sm:$0xff] }
   0xe   :  { %168 = vmatprep.mubr.bf16.mxu0 %v2389_v0  ;;  %241 = vmatprep.mubr.bf16.mxu1 %v2389_v0  ;;  %v2130_v2 = vld [vmem:[%s2807_s1 + $0x2c] ss:$16 sps:$4 sm:$0xff]   ;;  %v2132_v3 = vld [vmem:[%s2807_s1 + $0x20] ss:$16 sps:$4 sm:$0xff]   ;;  %v2133_v4 = vld [vmem:[%s2807_s1 + $0x28] ss:$16 sps:$4 sm:$0xff]  }
   0xf   :  { %148 = vmatprep.subr.bf16.mxu0 %v2128_v1  ;;  %221 = vmatprep.subr.bf16.mxu1 %v2130_v2  ;;  %v2134_v5 = vld [vmem:[%s2807_s1 + $0x4] ss:$16 sps:$4 sm:$0xff]   ;;  %v2136_v6 = vld [vmem:[%s2807_s1 + $0xc] ss:$16 sps:$4 sm:$0xff]   ;;  %v2138_v7 = vld [vmem:[%s2807_s1] ss:$16 sps:$4 sm:$0xff]  }
  0x10   :  { %149 = vmatpush1.bf16.msra.mxu0 %v2132_v3  ;;  %222 = vmatpush1.bf16.msra.mxu1 %v2133_v4  ;;  %v2139_v8 = vld [vmem:[%s2807_s1 + $0x8] ss:$16 sps:$4 sm:$0xff]   ;;  %v41_v9 = vld [vmem:[%s2806_s0] sm:$0xff]  ;;  %vm123_vm0 = vcmask 261120   ;;  %v43_v16 = vld [vmem:[%s2806_s0 + $0x10] sm:$0xff]  ;;  %vm1853_vm1 = vcmask 64512  }
  0x11   :  { %150 = vmatprep.subr.bf16.mxu0 %v2134_v5  ;;  %223 = vmatprep.subr.bf16.mxu1 %v2136_v6  ;;  %v49_v11 = vpack.c.bf16 %v42_v10, %v41_v9  ;;  %v2140_v12 = vld [vmem:[#allocation2 + $0xe0] ss:$16 sps:$4 sm:$0xff]   ;;  %v2142_v13 = vld [vmem:[#allocation2 + $0xe4] ss:$16 sps:$4 sm:$0xff]   ;;  %v44_v18 = vld [vmem:[%s2806_s0 + $0x18] sm:$0xff] }
  0x12   :  { %v2143_v14 = vld [vmem:[#allocation2 + $0x2e0] ss:$16 sps:$4 sm:$0xff]   ;;  %v2145_v15 = vld [vmem:[#allocation2 + $0x2e4] ss:$16 sps:$4 sm:$0xff]   ;;  %v50_v22 = vpack.c.bf16 %v44_v18, %v43_v16  ;;  %v46_v30 = vld [vmem:[%s2806_s0 + $0x28] sm:$0xff] }
  0x13   :  { %v2148_v17 = vld [vmem:[#allocation2 + $0xc4] ss:$16 sps:$4 sm:$0xff]   ;;  %v2146_v20 = vld [vmem:[#allocation2 + $0xc0] ss:$16 sps:$4 sm:$0xff]   ;;  %v48_v41 = vld [vmem:[%s2806_s0 + $0x38] sm:$0xff] }
  0x14   :  { %151 = vmatpush1.bf16.msra.mxu0 %v2138_v7  ;;  %224 = vmatpush1.bf16.msra.mxu1 %v2139_v8  ;;  %v2151_v19 = vld [vmem:[#allocation2 + $0x2c4] ss:$16 sps:$4 sm:$0xff]   ;;  %v2149_v21 = vld [vmem:[#allocation2 + $0x2c0] ss:$16 sps:$4 sm:$0xff]  }
  0x15   :  { %1120 = vmatprep.subr.bf16.mxu0 %v2142_v13  ;;  %1193 = vmatprep.subr.bf16.mxu1 %v2145_v15  ;;  %v2154_v23 = vld [vmem:[#allocation2 + $0xa4] ss:$16 sps:$4 sm:$0xff]   ;;  %v2152_v26 = vld [vmem:[#allocation2 + $0xa0] ss:$16 sps:$4 sm:$0xff]  }
  0x16   :  { %v2157_v24 = vld [vmem:[#allocation2 + $0x2a4] ss:$16 sps:$4 sm:$0xff]   ;;  %v2155_v27 = vld [vmem:[#allocation2 + $0x2a0] ss:$16 sps:$4 sm:$0xff]  }
  0x17   :  { %1875 = vmatmul.mubr.msk.bf16.vlgmr.msra.gmra.mxu0 %vm123_vm0, %v49_v11  ;;  %1879 = vmatmul.mubr.msk.bf16.vlgmr.msra.gmra.mxu1 %vm123_vm0, %v49_v11  ;;  %v45_v25 = vld [vmem:[%s2806_s0 + $0x20] sm:$0xff]  ;;  %v47_v36 = vld [vmem:[%s2806_s0 + $0x30] sm:$0xff] }
  0x18   :  { %178 = vmatprep.mubr.bf16.mxu0 %v2389_v0  ;;  %251 = vmatprep.mubr.bf16.mxu1 %v2389_v0  ;;  %v2160_v28 = vld [vmem:[#allocation2 + $0x84] ss:$16 sps:$4 sm:$0xff]   ;;  %v2158_v31 = vld [vmem:[#allocation2 + $0x80] ss:$16 sps:$4 sm:$0xff]   ;;  %v51_v33 = vpack.c.bf16 %v46_v30, %v45_v25  ;;  %v52_v44 = vpack.c.bf16 %v48_v41, %v47_v36 }
  0x19   :  { %1121 = vmatpush1.bf16.msra.mxu0 %v2140_v12  ;;  %1194 = vmatpush1.bf16.msra.mxu1 %v2143_v14  ;;  %v2163_v29 = vld [vmem:[#allocation2 + $0x284] ss:$16 sps:$4 sm:$0xff]   ;;  %v2161_v32 = vld [vmem:[#allocation2 + $0x280] ss:$16 sps:$4 sm:$0xff]  }
  0x1a   :  { %1122 = vmatprep.subr.bf16.mxu0 %v2148_v17  ;;  %1195 = vmatprep.subr.bf16.mxu1 %v2151_v19  ;;  %v2166_v34 = vld [vmem:[#allocation2 + $0x64] ss:$16 sps:$4 sm:$0xff]   ;;  %v2164_v37 = vld [vmem:[#allocation2 + $0x60] ss:$16 sps:$4 sm:$0xff]  }
  0x1b   :  { %v2169_v35 = vld [vmem:[#allocation2 + $0x264] ss:$16 sps:$4 sm:$0xff]   ;;  %v2167_v38 = vld [vmem:[#allocation2 + $0x260] ss:$16 sps:$4 sm:$0xff]  }
  0x1c   :  { %v2172_v39 = vld [vmem:[#allocation2 + $0x44] ss:$16 sps:$4 sm:$0xff]   ;;  %v2170_v42 = vld [vmem:[#allocation2 + $0x40] ss:$16 sps:$4 sm:$0xff]  }
  0x1d   :  { %1123 = vmatpush1.bf16.msra.mxu0 %v2146_v20  ;;  %1196 = vmatpush1.bf16.msra.mxu1 %v2149_v21  ;;  %v2175_v40 = vld [vmem:[#allocation2 + $0x244] ss:$16 sps:$4 sm:$0xff]   ;;  %v2173_v43 = vld [vmem:[#allocation2 + $0x240] ss:$16 sps:$4 sm:$0xff]   ;;  %v2238_v21 = vld [vmem:[#allocation2 + $0xec] ss:$16 sps:$4 sm:$0xff]  }
  0x1e   :  { %1124 = vmatprep.subr.bf16.mxu0 %v2154_v23  ;;  %1197 = vmatprep.subr.bf16.mxu1 %v2157_v24  ;;  %v2178_v45 = vld [vmem:[#allocation2 + $0x24] ss:$16 sps:$4 sm:$0xff]   ;;  %v2176_v47 = vld [vmem:[#allocation2 + $0x20] ss:$16 sps:$4 sm:$0xff]   ;;  %v63_v23 = vlaneseq }
  0x1f   :  { %1876 = vmatmul.mubr.msk.bf16.gmra.mxu0 %vm123_vm0, %v50_v22  ;;  %1880 = vmatmul.mubr.msk.bf16.gmra.mxu1 %vm123_vm0, %v50_v22  ;;  %v2181_v46 = vld [vmem:[#allocation2 + $0x224] ss:$16 sps:$4 sm:$0xff]   ;;  %v2179_v48 = vld [vmem:[#allocation2 + $0x220] ss:$16 sps:$4 sm:$0xff]   ;;  %v2241_v22 = vld [vmem:[#allocation2 + $0x2ec] ss:$16 sps:$4 sm:$0xff]  }
  0x20   :  { %188 = vmatprep.mubr.bf16.mxu0 %v2389_v0  ;;  %261 = vmatprep.mubr.bf16.mxu1 %v2389_v0  ;;  %v2184_v49 = vld [vmem:[#allocation2 + $0x4] ss:$16 sps:$4 sm:$0xff]   ;;  %v2182_v51 = vld [vmem:[#allocation2] ss:$16 sps:$4 sm:$0xff]   ;;  %v2497_v24 = vshrl.u32 %v63_v23, 7 }
  0x21   :  { %1125 = vmatpush1.bf16.msra.mxu0 %v2152_v26  ;;  %1198 = vmatpush1.bf16.msra.mxu1 %v2155_v27  ;;  %v2187_v50 = vld [vmem:[#allocation2 + $0x204] ss:$16 sps:$4 sm:$0xff]   ;;  %v2185_v52 = vld [vmem:[#allocation2 + $0x200] ss:$16 sps:$4 sm:$0xff]  }
  0x22   :  { %1126 = vmatprep.subr.bf16.mxu0 %v2160_v28  ;;  %1199 = vmatprep.subr.bf16.mxu1 %v2163_v29  ;;  %v2190_v53 = vld [vmem:[#allocation2 + $0x1e4] ss:$16 sps:$4 sm:$0xff]   ;;  %v2188_v55 = vld [vmem:[#allocation2 + $0x1e0] ss:$16 sps:$4 sm:$0xff]   ;;  %v69_v25 = vsub.s32 1, %v2497_v24  ;;  %v77_v26 = vsub.s32 3, %v2497_v24 }
  0x23   :  { %v2193_v54 = vld [vmem:[#allocation2 + $0x3e4] ss:$16 sps:$4 sm:$0xff]   ;;  %v2191_v56 = vld [vmem:[#allocation2 + $0x3e0] ss:$16 sps:$4 sm:$0xff]   ;;  %v65_v27 = vsub.s32 0, %v2497_v24  ;;  %v73_v28 = vsub.s32 2, %v2497_v24 }
  0x24   :  { %v2196_v57 = vld [vmem:[#allocation2 + $0x1c4] ss:$16 sps:$4 sm:$0xff]   ;;  %v2194_v59 = vld [vmem:[#allocation2 + $0x1c0] ss:$16 sps:$4 sm:$0xff]  }
  0x25   :  { %1127 = vmatpush1.bf16.msra.mxu0 %v2158_v31  ;;  %1200 = vmatpush1.bf16.msra.mxu1 %v2161_v32  ;;  %v2199_v58 = vld [vmem:[#allocation2 + $0x3c4] ss:$16 sps:$4 sm:$0xff]   ;;  %v2197_v60 = vld [vmem:[#allocation2 + $0x3c0] ss:$16 sps:$4 sm:$0xff]  }
  0x26   :  { %1128 = vmatprep.subr.bf16.mxu0 %v2166_v34  ;;  %1201 = vmatprep.subr.bf16.mxu1 %v2169_v35  ;;  %v2202_v61 = vld [vmem:[#allocation2 + $0x1a4] ss:$16 sps:$4 sm:$0xff]   ;;  %v2200_v63 = vld [vmem:[#allocation2 + $0x1a0] ss:$16 sps:$4 sm:$0xff]  }
  0x27   :  { %1877 = vmatmul.mubr.msk.bf16.gmra.mxu0 %vm123_vm0, %v51_v33  ;;  %1881 = vmatmul.mubr.msk.bf16.gmra.mxu1 %vm123_vm0, %v51_v33  ;;  %v2205_v62 = vld [vmem:[#allocation2 + $0x3a4] ss:$16 sps:$4 sm:$0xff]   ;;  %v2206_v3 = vld [vmem:[#allocation2 + $0x180] ss:$16 sps:$4 sm:$0xff]  }
  0x28   :  { %198 = vmatprep.mubr.bf16.mxu0 %v2389_v0  ;;  %271 = vmatprep.mubr.bf16.mxu1 %v2389_v0  ;;  %v2203_v0 = vld [vmem:[#allocation2 + $0x3a0] ss:$16 sps:$4 sm:$0xff]   ;;  %v2208_v1 = vld [vmem:[#allocation2 + $0x184] ss:$16 sps:$4 sm:$0xff]  }
  0x29   :  { %1129 = vmatpush1.bf16.msra.mxu0 %v2164_v37  ;;  %1202 = vmatpush1.bf16.msra.mxu1 %v2167_v38  ;;  %v2211_v2 = vld [vmem:[#allocation2 + $0x384] ss:$16 sps:$4 sm:$0xff]   ;;  %v2209_v4 = vld [vmem:[#allocation2 + $0x380] ss:$16 sps:$4 sm:$0xff]  }
  0x2a   :  { %1130 = vmatprep.subr.bf16.mxu0 %v2172_v39  ;;  %1203 = vmatprep.subr.bf16.mxu1 %v2175_v40  ;;  %v2214_v5 = vld [vmem:[#allocation2 + $0x164] ss:$16 sps:$4 sm:$0xff]   ;;  %v2212_v7 = vld [vmem:[#allocation2 + $0x160] ss:$16 sps:$4 sm:$0xff]  }
  0x2b   :  { %v2217_v6 = vld [vmem:[#allocation2 + $0x364] ss:$16 sps:$4 sm:$0xff]   ;;  %v2215_v8 = vld [vmem:[#allocation2 + $0x360] ss:$16 sps:$4 sm:$0xff]  }
  0x2c   :  { %v2220_v9 = vld [vmem:[#allocation2 + $0x144] ss:$16 sps:$4 sm:$0xff]   ;;  %v2218_v11 = vld [vmem:[#allocation2 + $0x140] ss:$16 sps:$4 sm:$0xff]  }
  0x2d   :  { %1131 = vmatpush1.bf16.msra.mxu0 %v2170_v42  ;;  %1204 = vmatpush1.bf16.msra.mxu1 %v2173_v43  ;;  %v2223_v10 = vld [vmem:[#allocation2 + $0x344] ss:$16 sps:$4 sm:$0xff]   ;;  %v2221_v12 = vld [vmem:[#allocation2 + $0x340] ss:$16 sps:$4 sm:$0xff]  }
  0x2e   :  { %1132 = vmatprep.subr.bf16.mxu0 %v2178_v45  ;;  %1205 = vmatprep.subr.bf16.mxu1 %v2181_v46  ;;  %v2226_v13 = vld [vmem:[#allocation2 + $0x124] ss:$16 sps:$4 sm:$0xff]   ;;  %v2224_v15 = vld [vmem:[#allocation2 + $0x120] ss:$16 sps:$4 sm:$0xff]  }
  0x2f   :  { %1878 = vmatmul.mubr.msk.bf16.gmra.mxu0 %vm123_vm0, %v52_v44  ;;  %1882 = vmatmul.mubr.msk.bf16.gmra.mxu1 %vm123_vm0, %v52_v44  ;;  %v2229_v14 = vld [vmem:[#allocation2 + $0x324] ss:$16 sps:$4 sm:$0xff]   ;;  %v2227_v16 = vld [vmem:[#allocation2 + $0x320] ss:$16 sps:$4 sm:$0xff]  }
  0x30   :  { %v2232_v17 = vld [vmem:[#allocation2 + $0x104] ss:$16 sps:$4 sm:$0xff]   ;;  %v2230_v19 = vld [vmem:[#allocation2 + $0x100] ss:$16 sps:$4 sm:$0xff]  }
  0x31   :  { %1133 = vmatpush1.bf16.msra.mxu0 %v2176_v47  ;;  %1206 = vmatpush1.bf16.msra.mxu1 %v2179_v48  ;;  %v2235_v18 = vld [vmem:[#allocation2 + $0x304] ss:$16 sps:$4 sm:$0xff]   ;;  %v2233_v20 = vld [vmem:[#allocation2 + $0x300] ss:$16 sps:$4 sm:$0xff]  }
  0x32   :  { %1134 = vmatprep.subr.bf16.mxu0 %v2184_v49  ;;  %1207 = vmatprep.subr.bf16.mxu1 %v2187_v50  ;;  %v61_v29 = vld [vmem:[%s2808_s2] sm:$0xf] }
  0x33   :  { %v2508_v32 = vrot.slane %v61_v29, %v69_v25  ;;  %v2512_v33 = vrot.slane %v61_v29, %v77_v26  ;;  %v2516_v34 = vrot.slane %v61_v29, %v65_v27  ;;  %v2520_v35 = vrot.slane %v61_v29, %v73_v28  ;;  %v2242_v29 = vld [vmem:[#allocation2 + $0xc8] ss:$16 sps:$4 sm:$0xff]  }
  0x35   :  { %1135 = vmatpush1.bf16.msra.mxu0 %v2182_v51  ;;  %1208 = vmatpush1.bf16.msra.mxu1 %v2185_v52 }
  0x36   :  { %1136 = vmatprep.subr.bf16.mxu0 %v2190_v53  ;;  %1209 = vmatprep.subr.bf16.mxu1 %v2193_v54 }
  0x39   :  { %1137 = vmatpush2.bf16.msra.mxu0 %v2188_v55  ;;  %1210 = vmatpush2.bf16.msra.mxu1 %v2191_v56 }
  0x3a   :  { %1138 = vmatprep.subr.bf16.mxu0 %v2196_v57  ;;  %1211 = vmatprep.subr.bf16.mxu1 %v2199_v58 }
  0x3d   :  { %1139 = vmatpush2.bf16.msra.mxu0 %v2194_v59  ;;  %1212 = vmatpush2.bf16.msra.mxu1 %v2197_v60 }
  0x3e   :  { %1140 = vmatprep.subr.bf16.mxu0 %v2202_v61  ;;  %1213 = vmatprep.subr.bf16.mxu1 %v2205_v62 }
  0x41   :  { %1141 = vmatpush2.bf16.msra.mxu0 %v2200_v63  ;;  %1214 = vmatpush2.bf16.msra.mxu1 %v2203_v0 }
  0x42   :  { %1142 = vmatprep.subr.bf16.mxu0 %v2208_v1  ;;  %1215 = vmatprep.subr.bf16.mxu1 %v2211_v2 }
  0x45   :  { %1143 = vmatpush2.bf16.msra.mxu0 %v2206_v3  ;;  %1216 = vmatpush2.bf16.msra.mxu1 %v2209_v4  ;;  %v2236_v4 = vld [vmem:[#allocation2 + $0xe8] ss:$16 sps:$4 sm:$0xff]  }
  0x46   :  { %1144 = vmatprep.subr.bf16.mxu0 %v2214_v5  ;;  %1217 = vmatprep.subr.bf16.mxu1 %v2217_v6  ;;  %v2239_v5 = vld [vmem:[#allocation2 + $0x2e8] ss:$16 sps:$4 sm:$0xff]  }
  0x49   :  { %1145 = vmatpush2.bf16.msra.mxu0 %v2212_v7  ;;  %1218 = vmatpush2.bf16.msra.mxu1 %v2215_v8 }
  0x4a   :  { %1146 = vmatprep.subr.bf16.mxu0 %v2220_v9  ;;  %1219 = vmatprep.subr.bf16.mxu1 %v2223_v10  ;;  %v2244_v10 = vld [vmem:[#allocation2 + $0xcc] ss:$16 sps:$4 sm:$0xff]  }
  0x4d   :  { %1147 = vmatpush2.bf16.msra.mxu0 %v2218_v11  ;;  %1220 = vmatpush2.bf16.msra.mxu1 %v2221_v12  ;;  %v2247_v11 = vld [vmem:[#allocation2 + $0x2cc] ss:$16 sps:$4 sm:$0xff]  }
  0x4e   :  { %1148 = vmatprep.subr.bf16.mxu0 %v2226_v13  ;;  %1221 = vmatprep.subr.bf16.mxu1 %v2229_v14 }
  0x51   :  { %1149 = vmatpush2.bf16.msra.mxu0 %v2224_v15  ;;  %1222 = vmatpush2.bf16.msra.mxu1 %v2227_v16 }
  0x52   :  { %1150 = vmatprep.subr.bf16.mxu0 %v2232_v17  ;;  %1223 = vmatprep.subr.bf16.mxu1 %v2235_v18 }
  0x55   :  { %1151 = vmatpush2.bf16.msra.mxu0 %v2230_v19  ;;  %1224 = vmatpush2.bf16.msra.mxu1 %v2233_v20 }
  0x56   :  { %1266 = vmatprep.subr.bf16.mxu0 %v2238_v21  ;;  %1339 = vmatprep.subr.bf16.mxu1 %v2241_v22 }
  0xd7   :  { %v170_v30 = vpop.f32.mrf.mxu0  ;;  %v243_v31 = vpop.f32.mrf.mxu1 }
  0xd8   :  { %v171_v44 = vadd.f32 %v170_v30, %v2516_v34  ;;  %v244_v45 = vadd.f32 %v243_v31, %v2520_v35 }
  0xd9   :  { %v172_v36 = vpop.f32.mrf.mxu0  ;;  %v245_v37 = vpop.f32.mrf.mxu1 }
  0xda   :  { %v173_v40 = vadd.f32 %v172_v36, %v2508_v32  ;;  %v246_v41 = vadd.f32 %v245_v37, %v2512_v33  ;;  %v282_v58 = vmax.f32 %v171_v44, 0.0  ;;  %v284_v59 = vmax.f32 %v244_v45, 0.0  ;;  %v2245_v36 = vld [vmem:[#allocation2 + $0x2c8] ss:$16 sps:$4 sm:$0xff]   ;;  %v2250_v37 = vld [vmem:[#allocation2 + $0xac] ss:$16 sps:$4 sm:$0xff]  }
  0xdb   :  { %v174_v38 = vpop.f32.mrf.mxu0  ;;  %v247_v39 = vpop.f32.mrf.mxu1 }
  0xdc   :  { %v175_v42 = vadd.f32 %v174_v38, %v2516_v34  ;;  %v248_v43 = vadd.f32 %v247_v39, %v2520_v35  ;;  %v283_v54 = vmax.f32 %v173_v40, 0.0  ;;  %v285_v55 = vmax.f32 %v246_v41, 0.0 }
  0xdd   :  { %v176_v46 = vpop.f32.mrf.mxu0  ;;  %v249_v47 = vpop.f32.mrf.mxu1 }
  0xde   :  { %v177_v48 = vadd.f32 %v176_v46, %v2508_v32  ;;  %v250_v49 = vadd.f32 %v249_v47, %v2512_v33  ;;  %v286_v50 = vmax.f32 %v175_v42, 0.0  ;;  %v288_v51 = vmax.f32 %v248_v43, 0.0  ;;  %v2253_v46 = vld [vmem:[#allocation2 + $0x2ac] ss:$16 sps:$4 sm:$0xff]  }
  0xdf   :  { %v180_v52 = vpop.f32.mrf.mxu0  ;;  %v253_v53 = vpop.f32.mrf.mxu1 }
  0xe0   :  { %v287_v56 = vmax.f32 %v177_v48, 0.0  ;;  %v289_v57 = vmax.f32 %v250_v49, 0.0  ;;  %v181_v60 = vadd.f32 %v180_v52, %v2516_v34  ;;  %v254_v61 = vadd.f32 %v253_v53, %v2520_v35 }
  0xe1   :  { %v182_v62 = vpop.f32.mrf.mxu0  ;;  %v255_v63 = vpop.f32.mrf.mxu1  ;;  %v2538_v6 = vpack.c.bf16 %v286_v50, %v282_v58  ;;  %v2540_v7 = vpack.c.bf16 %v288_v51, %v284_v59  ;;  %v2248_v51 = vld [vmem:[#allocation2 + $0xa8] ss:$16 sps:$4 sm:$0xff]   ;;  %v2259_v58 = vld [vmem:[#allocation2 + $0x28c] ss:$16 sps:$4 sm:$0xff]  }
  0xe2   :  { %v2532_v0 = vpack.c.bf16 %v287_v56, %v283_v54  ;;  %v2534_v1 = vpack.c.bf16 %v289_v57, %v285_v55  ;;  %v183_v2 = vadd.f32 %v182_v62, %v2508_v32  ;;  %v256_v3 = vadd.f32 %v255_v63, %v2512_v33  ;;  %v2251_v54 = vld [vmem:[#allocation2 + $0x2a8] ss:$16 sps:$4 sm:$0xff]   ;;  %v2256_v55 = vld [vmem:[#allocation2 + $0x8c] ss:$16 sps:$4 sm:$0xff]  }
  0xe3   :  { %v184_v8 = vpop.f32.mrf.mxu0  ;;  %v257_v9 = vpop.f32.mrf.mxu1  ;;  %v290_v14 = vmax.f32 %v181_v60, 0.0  ;;  %v292_v15 = vmax.f32 %v254_v61, 0.0 }
  0xe4   :  { %v185_v12 = vadd.f32 %v184_v8, %v2516_v34  ;;  %v258_v13 = vadd.f32 %v257_v9, %v2520_v35  ;;  %1152 = vmatprep.mubr.bf16.mxu0 %v2532_v0  ;;  %1225 = vmatprep.mubr.bf16.mxu1 %v2534_v1  ;;  %v291_v16 = vmax.f32 %v183_v2, 0.0  ;;  %v293_v17 = vmax.f32 %v256_v3, 0.0  ;;  %v2254_v9 = vld [vmem:[#allocation2 + $0x88] ss:$16 sps:$4 sm:$0xff]  }
  0xe5   :  { %v186_v18 = vpop.f32.mrf.mxu0  ;;  %v259_v19 = vpop.f32.mrf.mxu1  ;;  %1153 = vmatmul.mubr.bf16.vlgmr.msra.gmra.mxu0 %v2538_v6  ;;  %1226 = vmatmul.mubr.bf16.vlgmr.msra.gmra.mxu1 %v2540_v7 }
  0xe6   :  { %v294_v20 = vmax.f32 %v185_v12, 0.0  ;;  %v296_v21 = vmax.f32 %v258_v13, 0.0  ;;  %v187_v22 = vadd.f32 %v186_v18, %v2508_v32  ;;  %v260_v23 = vadd.f32 %v259_v19, %v2512_v33  ;;  %1267 = vmatpush1.bf16.msra.mxu0 %v2236_v4  ;;  %1340 = vmatpush1.bf16.msra.mxu1 %v2239_v5  ;;  %v2257_v12 = vld [vmem:[#allocation2 + $0x288] ss:$16 sps:$4 sm:$0xff]   ;;  %v2262_v13 = vld [vmem:[#allocation2 + $0x6c] ss:$16 sps:$4 sm:$0xff]  }
  0xe7   :  { %v190_v30 = vpop.f32.mrf.mxu0  ;;  %v263_v31 = vpop.f32.mrf.mxu1  ;;  %1268 = vmatprep.subr.bf16.mxu0 %v2244_v10  ;;  %1341 = vmatprep.subr.bf16.mxu1 %v2247_v11 }
  0xe8   :  { %v295_v38 = vmax.f32 %v187_v22, 0.0  ;;  %v297_v39 = vmax.f32 %v260_v23, 0.0  ;;  %v2550_v40 = vpack.c.bf16 %v294_v20, %v290_v14  ;;  %v2552_v41 = vpack.c.bf16 %v296_v21, %v292_v15  ;;  %v2265_v22 = vld [vmem:[#allocation2 + $0x26c] ss:$16 sps:$4 sm:$0xff]  }
  0xe9   :  { %v191_v42 = vadd.f32 %v190_v30, %v2516_v34  ;;  %v264_v43 = vadd.f32 %v263_v31, %v2520_v35  ;;  %v192_v44 = vpop.f32.mrf.mxu0  ;;  %v265_v45 = vpop.f32.mrf.mxu1 }
  0xea   :  { %v2556_v47 = vpack.c.bf16 %v295_v38, %v291_v16  ;;  %v2558_v48 = vpack.c.bf16 %v297_v39, %v293_v17  ;;  %v193_v49 = vadd.f32 %v192_v44, %v2508_v32  ;;  %v266_v50 = vadd.f32 %v265_v45, %v2512_v33  ;;  %1269 = vmatpush1.bf16.msra.mxu0 %v2242_v29  ;;  %v2263_v39 = vld [vmem:[#allocation2 + $0x268] ss:$16 sps:$4 sm:$0xff]   ;;  %v2271_v45 = vld [vmem:[#allocation2 + $0x24c] ss:$16 sps:$4 sm:$0xff]  }
  0xeb   :  { %1342 = vmatpush1.bf16.msra.mxu1 %v2245_v36  ;;  %v194_v52 = vpop.f32.mrf.mxu0  ;;  %v267_v53 = vpop.f32.mrf.mxu1  ;;  %1270 = vmatprep.subr.bf16.mxu0 %v2250_v37  ;;  %v298_v59 = vmax.f32 %v191_v42, 0.0  ;;  %v300_v60 = vmax.f32 %v264_v43, 0.0  ;;  %v2260_v36 = vld [vmem:[#allocation2 + $0x68] ss:$16 sps:$4 sm:$0xff]   ;;  %v2268_v42 = vld [vmem:[#allocation2 + $0x4c] ss:$16 sps:$4 sm:$0xff]  }
  0xec   :  { %v195_v56 = vadd.f32 %v194_v52, %v2516_v34  ;;  %v268_v57 = vadd.f32 %v267_v53, %v2520_v35  ;;  %1162 = vmatprep.mubr.bf16.mxu0 %v2556_v47  ;;  %1235 = vmatprep.mubr.bf16.mxu1 %v2558_v48  ;;  %v299_v61 = vmax.f32 %v193_v49, 0.0  ;;  %v301_v62 = vmax.f32 %v266_v50, 0.0 }
  0xed   :  { %1343 = vmatprep.subr.bf16.mxu1 %v2253_v46  ;;  %v196_v63 = vpop.f32.mrf.mxu0  ;;  %v269_v2 = vpop.f32.mrf.mxu1  ;;  %1163 = vmatmul.mubr.bf16.gmra.mxu0 %v2550_v40 }
  0xee   :  { %v302_v3 = vmax.f32 %v195_v56, 0.0  ;;  %v304_v4 = vmax.f32 %v268_v57, 0.0  ;;  %v197_v5 = vadd.f32 %v196_v63, %v2508_v32  ;;  %v270_v8 = vadd.f32 %v269_v2, %v2512_v33  ;;  %1236 = vmatmul.mubr.bf16.gmra.mxu1 %v2552_v41  ;;  %1271 = vmatpush1.bf16.msra.mxu0 %v2248_v51  ;;  %v2266_v56 = vld [vmem:[#allocation2 + $0x48] ss:$16 sps:$4 sm:$0xff]  }
  0xef   :  { %1344 = vmatpush1.bf16.msra.mxu1 %v2251_v54  ;;  %v200_v10 = vpop.f32.mrf.mxu0  ;;  %v273_v11 = vpop.f32.mrf.mxu1  ;;  %1272 = vmatprep.subr.bf16.mxu0 %v2256_v55  ;;  %v2269_v57 = vld [vmem:[#allocation2 + $0x248] ss:$16 sps:$4 sm:$0xff]  }
  0xf0   :  { %v303_v14 = vmax.f32 %v197_v5, 0.0  ;;  %v305_v15 = vmax.f32 %v270_v8, 0.0  ;;  %1345 = vmatprep.subr.bf16.mxu1 %v2259_v58  ;;  %v2570_v16 = vpack.c.bf16 %v302_v3, %v298_v59  ;;  %v2572_v17 = vpack.c.bf16 %v304_v4, %v300_v60  ;;  %v2274_v58 = vld [vmem:[#allocation2 + $0x2c] ss:$16 sps:$4 sm:$0xff]   ;;  %v2275_v3 = vld [vmem:[#allocation2 + $0x228] ss:$16 sps:$4 sm:$0xff]  }
  0xf1   :  { %v201_v18 = vadd.f32 %v200_v10, %v2516_v34  ;;  %v274_v19 = vadd.f32 %v273_v11, %v2520_v35  ;;  %v202_v20 = vpop.f32.mrf.mxu0  ;;  %v275_v21 = vpop.f32.mrf.mxu1  ;;  %v2280_v4 = vld [vmem:[#allocation2 + $0xc] ss:$16 sps:$4 sm:$0xff]   ;;  %v2278_v8 = vld [vmem:[#allocation2 + $0x8] ss:$16 sps:$4 sm:$0xff]  }
  0xf2   :  { %v2576_v23 = vpack.c.bf16 %v303_v14, %v299_v61  ;;  %v2578_v29 = vpack.c.bf16 %v305_v15, %v301_v62  ;;  %v203_v30 = vadd.f32 %v202_v20, %v2508_v32  ;;  %v276_v31 = vadd.f32 %v275_v21, %v2512_v33  ;;  %1273 = vmatpush1.bf16.msra.mxu0 %v2254_v9  ;;  %v2277_v62 = vld [vmem:[#allocation2 + $0x22c] ss:$16 sps:$4 sm:$0xff]   ;;  %v2281_v9 = vld [vmem:[#allocation2 + $0x208] ss:$16 sps:$4 sm:$0xff]  }
  0xf3   :  { %1346 = vmatpush1.bf16.msra.mxu1 %v2257_v12  ;;  %v204_v37 = vpop.f32.mrf.mxu0  ;;  %v277_v38 = vpop.f32.mrf.mxu1  ;;  %1274 = vmatprep.subr.bf16.mxu0 %v2262_v13  ;;  %v306_v46 = vmax.f32 %v201_v18, 0.0  ;;  %v308_v49 = vmax.f32 %v274_v19, 0.0  ;;  %v2283_v5 = vld [vmem:[#allocation2 + $0x20c] ss:$16 sps:$4 sm:$0xff]   ;;  %v2284_v12 = vld [vmem:[#allocation2 + $0x1e8] ss:$16 sps:$4 sm:$0xff]  }
  0xf4   :  { %v205_v43 = vadd.f32 %v204_v37, %v2516_v34  ;;  %v278_v44 = vadd.f32 %v277_v38, %v2520_v35  ;;  %1172 = vmatprep.mubr.bf16.mxu0 %v2576_v23  ;;  %1245 = vmatprep.mubr.bf16.mxu1 %v2578_v29  ;;  %v307_v50 = vmax.f32 %v203_v30, 0.0  ;;  %v309_v51 = vmax.f32 %v276_v31, 0.0  ;;  %v2286_v10 = vld [vmem:[#allocation2 + $0x1ec] ss:$16 sps:$4 sm:$0xff]   ;;  %v2287_v13 = vld [vmem:[#allocation2 + $0x3e8] ss:$16 sps:$4 sm:$0xff]  }
  0xf5   :  { %1347 = vmatprep.subr.bf16.mxu1 %v2265_v22  ;;  %v206_v52 = vpop.f32.mrf.mxu0  ;;  %v279_v53 = vpop.f32.mrf.mxu1  ;;  %1173 = vmatmul.mubr.bf16.gmra.mxu0 %v2570_v16  ;;  %v2289_v11 = vld [vmem:[#allocation2 + $0x3ec] ss:$16 sps:$4 sm:$0xff]   ;;  %v2290_v18 = vld [vmem:[#allocation2 + $0x1c8] ss:$16 sps:$4 sm:$0xff]  }
  0xf6   :  { %v310_v54 = vmax.f32 %v205_v43, 0.0  ;;  %v312_v55 = vmax.f32 %v278_v44, 0.0  ;;  %v207_v34 = vadd.f32 %v206_v52, %v2508_v32  ;;  %v280_v35 = vadd.f32 %v279_v53, %v2512_v33  ;;  %1246 = vmatmul.mubr.bf16.gmra.mxu1 %v2572_v17  ;;  %1275 = vmatpush1.bf16.msra.mxu0 %v2260_v36  ;;  %v2272_v33 = vld [vmem:[#allocation2 + $0x28] ss:$16 sps:$4 sm:$0xff]   ;;  %v2292_v14 = vld [vmem:[#allocation2 + $0x1cc] ss:$16 sps:$4 sm:$0xff]  }
  0xf7   :  { %1348 = vmatpush1.bf16.msra.mxu1 %v2263_v39  ;;  %1276 = vmatprep.subr.bf16.mxu0 %v2268_v42  ;;  %v2295_v15 = vld [vmem:[#allocation2 + $0x3cc] ss:$16 sps:$4 sm:$0xff]   ;;  %v2299_v21 = vld [vmem:[#allocation2 + $0x3a8] ss:$16 sps:$4 sm:$0xff]  }
  0xf8   :  { %v311_v59 = vmax.f32 %v207_v34, 0.0  ;;  %v313_v60 = vmax.f32 %v280_v35, 0.0  ;;  %1349 = vmatprep.subr.bf16.mxu1 %v2271_v45  ;;  %v2590_v61 = vpack.c.bf16 %v310_v54, %v306_v46  ;;  %v2592_v63 = vpack.c.bf16 %v312_v55, %v308_v49  ;;  %v2298_v19 = vld [vmem:[#allocation2 + $0x1ac] ss:$16 sps:$4 sm:$0xff]   ;;  %v2302_v31 = vld [vmem:[#allocation2 + $0x188] ss:$16 sps:$4 sm:$0xff]  }
  0xf9   :  { %v2301_v20 = vld [vmem:[#allocation2 + $0x3ac] ss:$16 sps:$4 sm:$0xff]   ;;  %v2305_v36 = vld [vmem:[#allocation2 + $0x388] ss:$16 sps:$4 sm:$0xff]  }
  0xfa   :  { %v2594_v2 = vpack.c.bf16 %v311_v59, %v307_v50  ;;  %v2596_v32 = vpack.c.bf16 %v313_v60, %v309_v51  ;;  %1277 = vmatpush1.bf16.msra.mxu0 %v2266_v56  ;;  %v2304_v22 = vld [vmem:[#allocation2 + $0x18c] ss:$16 sps:$4 sm:$0xff]   ;;  %v2308_v39 = vld [vmem:[#allocation2 + $0x168] ss:$16 sps:$4 sm:$0xff]   ;;  %v2347_v60 = vld [vmem:[%s2811_s5] sm:$0xff]  }
  0xfb   :  { %1350 = vmatpush1.bf16.msra.mxu1 %v2269_v57  ;;  %1278 = vmatprep.subr.bf16.mxu0 %v2274_v58  ;;  %v2307_v30 = vld [vmem:[#allocation2 + $0x38c] ss:$16 sps:$4 sm:$0xff]   ;;  %v2311_v42 = vld [vmem:[#allocation2 + $0x368] ss:$16 sps:$4 sm:$0xff]   ;;  %v2334_v57 = vld [vmem:[%s2811_s5 + $0x70] sm:$0xff]  }
  0xfc   :  { %1182 = vmatprep.mubr.bf16.mxu0 %v2594_v2  ;;  %1255 = vmatprep.mubr.bf16.mxu1 %v2596_v32  ;;  %v2310_v37 = vld [vmem:[#allocation2 + $0x16c] ss:$16 sps:$4 sm:$0xff]   ;;  %v2314_v45 = vld [vmem:[#allocation2 + $0x148] ss:$16 sps:$4 sm:$0xff]   ;;  %v2335_v58 = vld [vmem:[%s2811_s5 + $0x30] sm:$0xff]  }
  0xfd   :  { %1351 = vmatprep.subr.bf16.mxu1 %v2277_v62  ;;  %1183 = vmatmul.mubr.bf16.gmra.mxu0 %v2590_v61  ;;  %v2313_v38 = vld [vmem:[#allocation2 + $0x36c] ss:$16 sps:$4 sm:$0xff]   ;;  %v2317_v46 = vld [vmem:[#allocation2 + $0x348] ss:$16 sps:$4 sm:$0xff]  }
  0xfe   :  { %1256 = vmatmul.mubr.bf16.gmra.mxu1 %v2592_v63  ;;  %1279 = vmatpush1.bf16.msra.mxu0 %v2272_v33  ;;  %v2316_v43 = vld [vmem:[#allocation2 + $0x14c] ss:$16 sps:$4 sm:$0xff]   ;;  %v2320_v51 = vld [vmem:[#allocation2 + $0x128] ss:$16 sps:$4 sm:$0xff]  }
  0xff   :  { %1352 = vmatpush1.bf16.msra.mxu1 %v2275_v3  ;;  %1298 = vmatprep.mubr.bf16.mxu0 %v2532_v0  ;;  %v2293_v0 = vld [vmem:[#allocation2 + $0x3c8] ss:$16 sps:$4 sm:$0xff]   ;;  %v2319_v44 = vld [vmem:[#allocation2 + $0x34c] ss:$16 sps:$4 sm:$0xff]   ;;  %v2354_v3 = vld [vmem:[%s2811_s5 + $0xe0] sm:$0xff]  }
 0x100   :  { %1371 = vmatprep.mubr.bf16.mxu1 %v2534_v1  ;;  %1280 = vmatprep.subr.bf16.mxu0 %v2280_v4  ;;  %v2296_v1 = vld [vmem:[#allocation2 + $0x1a8] ss:$16 sps:$4 sm:$0xff]   ;;  %v2322_v49 = vld [vmem:[#allocation2 + $0x12c] ss:$16 sps:$4 sm:$0xff]   ;;  %v2355_v4 = vld [vmem:[%s2811_s5 + $0xa0] sm:$0xff]  }
 0x101   :  { %1353 = vmatprep.subr.bf16.mxu1 %v2283_v5  ;;  %v2325_v50 = vld [vmem:[#allocation2 + $0x32c] ss:$16 sps:$4 sm:$0xff]   ;;  %v2323_v52 = vld [vmem:[#allocation2 + $0x328] ss:$16 sps:$4 sm:$0xff]  }
 0x102   :  { %1281 = vmatpush1.bf16.msra.mxu0 %v2278_v8  ;;  %v2328_v53 = vld [vmem:[#allocation2 + $0x10c] ss:$16 sps:$4 sm:$0xff]   ;;  %v2326_v55 = vld [vmem:[#allocation2 + $0x108] ss:$16 sps:$4 sm:$0xff]  }
 0x103   :  { %1354 = vmatpush1.bf16.msra.mxu1 %v2281_v9  ;;  %1282 = vmatprep.subr.bf16.mxu0 %v2286_v10  ;;  %v2331_v54 = vld [vmem:[#allocation2 + $0x30c] ss:$16 sps:$4 sm:$0xff]   ;;  %v2329_v34 = vld [vmem:[#allocation2 + $0x308] ss:$16 sps:$4 sm:$0xff]   ;;  %v2358_v9 = vld [vmem:[%s2811_s5 + $0xd0] sm:$0xff]  }
 0x104   :  { %1355 = vmatprep.subr.bf16.mxu1 %v2289_v11  ;;  %v2332_v35 = vld [vmem:[%s2811_s5 + $0x78] sm:$0xff]   ;;  %v2336_v59 = vld [vmem:[%s2811_s5 + $0x68] sm:$0xff]   ;;  %v2359_v10 = vld [vmem:[%s2811_s5 + $0x90] sm:$0xff]  }
 0x105   :  { %v2333_v56 = vld [vmem:[%s2811_s5 + $0x38] sm:$0xff]   ;;  %v2353_v33 = vld [vmem:[%s2811_s5 + $0xa8] sm:$0xff]  }
 0x106   :  { %1283 = vmatpush2.bf16.msra.mxu0 %v2284_v12  ;;  %v2348_v62 = vld [vmem:[%s2811_s5 + $0xf8] sm:$0xff]   ;;  %v2360_v11 = vld [vmem:[%s2811_s5 + $0xc8] sm:$0xff]  }
 0x107   :  { %1356 = vmatpush2.bf16.msra.mxu1 %v2287_v13  ;;  %1284 = vmatprep.subr.bf16.mxu0 %v2292_v14  ;;  %v2356_v5 = vld [vmem:[%s2811_s5 + $0xd8] sm:$0xff]   ;;  %v2361_v12 = vld [vmem:[%s2811_s5 + $0x88] sm:$0xff]   ;;  %v2362_v13 = vld [vmem:[%s2811_s5 + $0xc0] sm:$0xff]  }
 0x108   :  { %1357 = vmatprep.subr.bf16.mxu1 %v2295_v15  ;;  %v2357_v8 = vld [vmem:[%s2811_s5 + $0x98] sm:$0xff]   ;;  %v2363_v14 = vld [vmem:[%s2811_s5 + $0x80] sm:$0xff]  }
 0x109   :  { %v2717_v15 = vld [vmem:[%s2810_s4] sm:$0xf] }
 0x10a   :  { %1285 = vmatpush2.bf16.msra.mxu0 %v2290_v18  ;;  %v2722_v18 = vrot.slane %v2717_v15, %v69_v25 }
 0x10b   :  { %1358 = vmatpush2.bf16.msra.mxu1 %v2293_v0  ;;  %1286 = vmatprep.subr.bf16.mxu0 %v2298_v19  ;;  %v2727_v0 = vrot.slane %v2717_v15, %v65_v27 }
 0x10c   :  { %1359 = vmatprep.subr.bf16.mxu1 %v2301_v20 }
 0x10e   :  { %1287 = vmatpush2.bf16.msra.mxu0 %v2296_v1 }
 0x10f   :  { %1360 = vmatpush2.bf16.msra.mxu1 %v2299_v21  ;;  %1288 = vmatprep.subr.bf16.mxu0 %v2304_v22 }
 0x110   :  { %1361 = vmatprep.subr.bf16.mxu1 %v2307_v30 }
 0x112   :  { %1289 = vmatpush2.bf16.msra.mxu0 %v2302_v31 }
 0x113   :  { %1362 = vmatpush2.bf16.msra.mxu1 %v2305_v36  ;;  %1290 = vmatprep.subr.bf16.mxu0 %v2310_v37 }
 0x114   :  { %1363 = vmatprep.subr.bf16.mxu1 %v2313_v38 }
 0x116   :  { %1291 = vmatpush2.bf16.msra.mxu0 %v2308_v39 }
 0x117   :  { %1364 = vmatpush2.bf16.msra.mxu1 %v2311_v42  ;;  %1292 = vmatprep.subr.bf16.mxu0 %v2316_v43 }
 0x118   :  { %1365 = vmatprep.subr.bf16.mxu1 %v2319_v44 }
 0x11a   :  { %1293 = vmatpush2.bf16.msra.mxu0 %v2314_v45 }
 0x11b   :  { %1366 = vmatpush2.bf16.msra.mxu1 %v2317_v46  ;;  %1294 = vmatprep.subr.bf16.mxu0 %v2322_v49 }
 0x11c   :  { %1367 = vmatprep.subr.bf16.mxu1 %v2325_v50 }
 0x11e   :  { %1295 = vmatpush2.bf16.msra.mxu0 %v2320_v51 }
 0x11f   :  { %1368 = vmatpush2.bf16.msra.mxu1 %v2323_v52  ;;  %1296 = vmatprep.subr.bf16.mxu0 %v2328_v53 }
 0x120   :  { %1369 = vmatprep.subr.bf16.mxu1 %v2331_v54 }
 0x122   :  { %1297 = vmatpush2.bf16.msra.mxu0 %v2326_v55 }
 0x123   :  { %1370 = vmatpush2.bf16.msra.mxu1 %v2329_v34  ;;  %2044 = vmatprep.subr.bf16.mxu0 %v2332_v35 }
 0x124   :  { %2084 = vmatprep.subr.bf16.mxu1 %v2348_v62 }
 0x125   :  { %1299 = vmatmul.mubr.bf16.vlgmr.msra.gmra.mxu0 %v2538_v6  ;;  %v2337_v6 = vld [vmem:[%s2811_s5 + $0x28] sm:$0xff]  }
 0x126   :  { %1372 = vmatmul.mubr.bf16.vlgmr.msra.gmra.mxu1 %v2540_v7  ;;  %1308 = vmatprep.mubr.bf16.mxu0 %v2556_v47  ;;  %v2338_v7 = vld [vmem:[%s2811_s5 + $0x60] sm:$0xff]  }
 0x127   :  { %1381 = vmatprep.mubr.bf16.mxu1 %v2558_v48  ;;  %2045 = vmatpush3.bf16.msra.mxu0 %v2333_v56  ;;  %v2339_v47 = vld [vmem:[%s2811_s5 + $0x20] sm:$0xff]   ;;  %v2340_v48 = vld [vmem:[%s2811_s5 + $0x58] sm:$0xff]  }
 0x128   :  { %2046 = vmatprep.subr.bf16.mxu0 %v2334_v57 }
 0x12b   :  { %2047 = vmatpush3.bf16.msra.mxu0 %v2335_v58 }
 0x12c   :  { %2048 = vmatprep.subr.bf16.mxu0 %v2336_v59 }
 0x12d   :  { %1309 = vmatmul.mubr.bf16.gmra.mxu0 %v2550_v40  ;;  %v2341_v40 = vld [vmem:[%s2811_s5 + $0x18] sm:$0xff]  }
 0x12e   :  { %1382 = vmatmul.mubr.bf16.gmra.mxu1 %v2552_v41  ;;  %1318 = vmatprep.mubr.bf16.mxu0 %v2576_v23  ;;  %v2342_v41 = vld [vmem:[%s2811_s5 + $0x50] sm:$0xff]  }
 0x12f   :  { %1391 = vmatprep.mubr.bf16.mxu1 %v2578_v29  ;;  %2049 = vmatpush3.bf16.msra.mxu0 %v2337_v6  ;;  %v2343_v23 = vld [vmem:[%s2811_s5 + $0x10] sm:$0xff]   ;;  %v2344_v29 = vld [vmem:[%s2811_s5 + $0x48] sm:$0xff]  }
 0x130   :  { %2050 = vmatprep.subr.bf16.mxu0 %v2338_v7 }
 0x133   :  { %2051 = vmatpush3.bf16.msra.mxu0 %v2339_v47 }
 0x134   :  { %2052 = vmatprep.subr.bf16.mxu0 %v2340_v48 }
 0x135   :  { %1319 = vmatmul.mubr.bf16.gmra.mxu0 %v2570_v16  ;;  %v2345_v16 = vld [vmem:[%s2811_s5 + $0x8] sm:$0xff]  }
 0x136   :  { %1392 = vmatmul.mubr.bf16.gmra.mxu1 %v2572_v17  ;;  %1328 = vmatprep.mubr.bf16.mxu0 %v2594_v2  ;;  %v2346_v17 = vld [vmem:[%s2811_s5 + $0x40] sm:$0xff]   ;;  %v2349_v2 = vld [vmem:[%s2811_s5 + $0xb8] sm:$0xff]  }
 0x137   :  { %1401 = vmatprep.mubr.bf16.mxu1 %v2596_v32  ;;  %2053 = vmatpush3.bf16.msra.mxu0 %v2341_v40  ;;  %v2352_v32 = vld [vmem:[%s2811_s5 + $0xe8] sm:$0xff]  }
 0x138   :  { %2054 = vmatprep.subr.bf16.mxu0 %v2342_v41  ;;  %2085 = vmatpush3.bf16.msra.mxu1 %v2349_v2 }
 0x13b   :  { %2055 = vmatpush3.bf16.msra.mxu0 %v2343_v23 }
 0x13c   :  { %2056 = vmatprep.subr.bf16.mxu0 %v2344_v29 }
 0x13d   :  { %1329 = vmatmul.mubr.bf16.gmra.mxu0 %v2590_v61  ;;  %v2350_v61 = vld [vmem:[%s2811_s5 + $0xf0] sm:$0xff]  }
 0x13e   :  { %1402 = vmatmul.mubr.bf16.gmra.mxu1 %v2592_v63  ;;  %v2351_v63 = vld [vmem:[%s2811_s5 + $0xb0] sm:$0xff]   ;;  %2086 = vmatprep.subr.bf16.mxu1 %v2350_v61 }
 0x13f   :  { %2057 = vmatpush3.bf16.msra.mxu0 %v2345_v16  ;;  %2087 = vmatpush3.bf16.msra.mxu1 %v2351_v63 }
 0x140   :  { %2058 = vmatprep.subr.bf16.mxu0 %v2346_v17  ;;  %2088 = vmatprep.subr.bf16.mxu1 %v2352_v32 }
 0x143   :  { %2059 = vmatpush3.bf16.msra.mxu0 %v2347_v60  ;;  %2089 = vmatpush3.bf16.msra.mxu1 %v2353_v33 }
 0x144   :  { %2090 = vmatprep.subr.bf16.mxu1 %v2354_v3 }
 0x147   :  { %2091 = vmatpush3.bf16.msra.mxu1 %v2355_v4 }
 0x148   :  { %2092 = vmatprep.subr.bf16.mxu1 %v2356_v5 }
 0x14b   :  { %2093 = vmatpush3.bf16.msra.mxu1 %v2357_v8 }
 0x14c   :  { %2094 = vmatprep.subr.bf16.mxu1 %v2358_v9 }
 0x14f   :  { %2095 = vmatpush3.bf16.msra.mxu1 %v2359_v10 }
 0x150   :  { %2096 = vmatprep.subr.bf16.mxu1 %v2360_v11 }
 0x153   :  { %2097 = vmatpush3.bf16.msra.mxu1 %v2361_v12 }
 0x154   :  { %2098 = vmatprep.subr.bf16.mxu1 %v2362_v13 }
 0x157   :  { %2099 = vmatpush3.bf16.msra.mxu1 %v2363_v14 }
 0x1a5   :  { %v1154_v19 = vpop.f32.mrf.mxu0  ;;  %v1227_v20 = vpop.f32.mrf.mxu1 }
 0x1a6   :  { %v1155_v30 = vadd.f32 %v1154_v19, %v2727_v0 }
 0x1a7   :  { %v1156_v1 = vpop.f32.mrf.mxu0  ;;  %v1229_v21 = vpop.f32.mrf.mxu1 }
 0x1a8   :  { %v1157_v22 = vadd.f32 %v1156_v1, %v2722_v18  ;;  %v1228_v27 = vadd.f32 %v1227_v20, %v1155_v30 }
 0x1a9   :  { %v1158_v31 = vpop.f32.mrf.mxu0  ;;  %v1231_v36 = vpop.f32.mrf.mxu1 }
 0x1aa   :  { %v1159_v37 = vadd.f32 %v1158_v31, %v2727_v0  ;;  %v1230_v25 = vadd.f32 %v1229_v21, %v1157_v22  ;;  %v1412_v34 = vmax.f32 %v1228_v27, 0.0 }
 0x1ab   :  { %v1160_v38 = vpop.f32.mrf.mxu0  ;;  %v1233_v43 = vpop.f32.mrf.mxu1 }
 0x1ac   :  { %v1232_v39 = vadd.f32 %v1231_v36, %v1159_v37  ;;  %v1161_v42 = vadd.f32 %v1160_v38, %v2722_v18  ;;  %v1413_v52 = vmax.f32 %v1230_v25, 0.0 }
 0x1ad   :  { %v1164_v44 = vpop.f32.mrf.mxu0 }
 0x1ae   :  { %v1234_v45 = vadd.f32 %v1233_v43, %v1161_v42  ;;  %v1165_v46 = vadd.f32 %v1164_v44, %v2727_v0  ;;  %v1237_v49 = vpop.f32.mrf.mxu1  ;;  %v1416_v50 = vmax.f32 %v1232_v39, 0.0 }
 0x1af   :  { %v1166_v51 = vpop.f32.mrf.mxu0 }
 0x1b0   :  { %v1417_v53 = vmax.f32 %v1234_v45, 0.0  ;;  %v1167_v54 = vadd.f32 %v1166_v51, %v2722_v18  ;;  %v1239_v55 = vpop.f32.mrf.mxu1  ;;  %v1238_v35 = vadd.f32 %v1237_v49, %v1165_v46  ;;  %v1444_v7 = vpack.c.bf16 %v1416_v50, %v1412_v34 }
 0x1b1   :  { %v1168_v56 = vpop.f32.mrf.mxu0 }
 0x1b2   :  { %v1445_v57 = vpack.c.bf16 %v1417_v53, %v1413_v52  ;;  %v1169_v58 = vadd.f32 %v1168_v56, %v2727_v0  ;;  %v1240_v59 = vadd.f32 %v1239_v55, %v1167_v54  ;;  %v1241_v6 = vpop.f32.mrf.mxu1  ;;  %v1420_v23 = vmax.f32 %v1238_v35, 0.0 }
 0x1b3   :  { %v1170_v47 = vpop.f32.mrf.mxu0 }
 0x1b4   :  { %1755 = vmatprep.mubr.bf16.mxu0 %v1445_v57  ;;  %v1171_v48 = vadd.f32 %v1170_v47, %v2722_v18  ;;  %v1242_v40 = vadd.f32 %v1241_v6, %v1169_v58  ;;  %v1243_v41 = vpop.f32.mrf.mxu1  ;;  %v1421_v16 = vmax.f32 %v1240_v59, 0.0 }
 0x1b5   :  { %1756 = vmatmul.mubr.bf16.vlgmr.msra.gmra.mxu0 %v1444_v7  ;;  %v1174_v29 = vpop.f32.mrf.mxu0 }
 0x1b6   :  { %v1424_v17 = vmax.f32 %v1242_v40, 0.0  ;;  %v1175_v60 = vadd.f32 %v1174_v29, %v2727_v0  ;;  %v1244_v62 = vadd.f32 %v1243_v41, %v1171_v48  ;;  %v1247_v2 = vpop.f32.mrf.mxu1 }
 0x1b7   :  { %v1176_v61 = vpop.f32.mrf.mxu0 }
 0x1b8   :  { %v1425_v63 = vmax.f32 %v1244_v62, 0.0  ;;  %v1177_v32 = vadd.f32 %v1176_v61, %v2722_v18  ;;  %v1249_v33 = vpop.f32.mrf.mxu1  ;;  %v1448_v3 = vpack.c.bf16 %v1424_v17, %v1420_v23  ;;  %v1248_v4 = vadd.f32 %v1247_v2, %v1175_v60 }
 0x1b9   :  { %v1178_v5 = vpop.f32.mrf.mxu0 }
 0x1ba   :  { %v1449_v8 = vpack.c.bf16 %v1425_v63, %v1421_v16  ;;  %v1179_v9 = vadd.f32 %v1178_v5, %v2727_v0  ;;  %v1250_v10 = vadd.f32 %v1249_v33, %v1177_v32  ;;  %v1251_v11 = vpop.f32.mrf.mxu1  ;;  %v1428_v20 = vmax.f32 %v1248_v4, 0.0 }
 0x1bb   :  { %v1180_v12 = vpop.f32.mrf.mxu0 }
 0x1bc   :  { %v1181_v13 = vadd.f32 %v1180_v12, %v2722_v18  ;;  %v1252_v14 = vadd.f32 %v1251_v11, %v1179_v9  ;;  %1763 = vmatprep.mubr.bf16.mxu0 %v1449_v8  ;;  %v1253_v19 = vpop.f32.mrf.mxu1  ;;  %v1429_v21 = vmax.f32 %v1250_v10, 0.0 }
 0x1bd   :  { %v1184_v1 = vpop.f32.mrf.mxu0  ;;  %1764 = vmatmul.mubr.bf16.gmra.mxu0 %v1448_v3 }
 0x1be   :  { %v1432_v22 = vmax.f32 %v1252_v14, 0.0  ;;  %v1185_v30 = vadd.f32 %v1184_v1, %v2727_v0  ;;  %v1254_v31 = vadd.f32 %v1253_v19, %v1181_v13  ;;  %v1257_v36 = vpop.f32.mrf.mxu1 }
 0x1bf   :  { %v1186_v37 = vpop.f32.mrf.mxu0 }
 0x1c0   :  { %v1433_v38 = vmax.f32 %v1254_v31, 0.0  ;;  %v1187_v25 = vadd.f32 %v1186_v37, %v2722_v18  ;;  %v1259_v39 = vpop.f32.mrf.mxu1  ;;  %v1452_v42 = vpack.c.bf16 %v1432_v22, %v1428_v20  ;;  %v1258_v43 = vadd.f32 %v1257_v36, %v1185_v30 }
 0x1c1   :  { %v1188_v27 = vpop.f32.mrf.mxu0 }
 0x1c2   :  { %v1453_v44 = vpack.c.bf16 %v1433_v38, %v1429_v21  ;;  %v1189_v45 = vadd.f32 %v1188_v27, %v2727_v0  ;;  %v1260_v46 = vadd.f32 %v1259_v39, %v1187_v25  ;;  %v1261_v49 = vpop.f32.mrf.mxu1  ;;  %v1436_v54 = vmax.f32 %v1258_v43, 0.0 }
 0x1c3   :  { %v1190_v50 = vpop.f32.mrf.mxu0  ;;  %v2748_v0 = vrot.slane %v2717_v15, %v77_v26 }
 0x1c4   :  { %v1191_v51 = vadd.f32 %v1190_v50, %v2722_v18  ;;  %v1262_v52 = vadd.f32 %v1261_v49, %v1189_v45  ;;  %1771 = vmatprep.mubr.bf16.mxu0 %v1453_v44  ;;  %v1263_v53 = vpop.f32.mrf.mxu1  ;;  %v1437_v55 = vmax.f32 %v1260_v46, 0.0  ;;  %v2753_v18 = vrot.slane %v2717_v15, %v73_v28 }
 0x1c5   :  { %1772 = vmatmul.mubr.bf16.gmra.mxu0 %v1452_v42 }
 0x1c6   :  { %v1440_v34 = vmax.f32 %v1262_v52, 0.0  ;;  %v1264_v35 = vadd.f32 %v1263_v53, %v1191_v51 }
 0x1c8   :  { %v1441_v56 = vmax.f32 %v1264_v35, 0.0  ;;  %v1456_v57 = vpack.c.bf16 %v1440_v34, %v1436_v54 }
 0x1ca   :  { %v1457_v58 = vpack.c.bf16 %v1441_v56, %v1437_v55 }
 0x1cc   :  { %1779 = vmatprep.mubr.bf16.mxu0 %v1457_v58 }
 0x1cd   :  { %1780 = vmatmul.mubr.bf16.gmra.mxu0 %v1456_v57 }
 0x1e5   :  { %v1300_v59 = vpop.f32.mrf.mxu0 }
 0x1e6   :  { %v1373_v6 = vpop.f32.mrf.mxu1  ;;  %v1301_v40 = vadd.f32 %v1300_v59, %v2753_v18 }
 0x1e7   :  { %v1302_v7 = vpop.f32.mrf.mxu0 }
 0x1e8   :  { %v1303_v47 = vadd.f32 %v1302_v7, %v2748_v0  ;;  %v1375_v48 = vpop.f32.mrf.mxu1  ;;  %v1374_v28 = vadd.f32 %v1373_v6, %v1301_v40 }
 0x1e9   :  { %v1304_v41 = vpop.f32.mrf.mxu0 }
 0x1ea   :  { %v1305_v23 = vadd.f32 %v1304_v41, %v2753_v18  ;;  %v1377_v29 = vpop.f32.mrf.mxu1  ;;  %v1376_v26 = vadd.f32 %v1375_v48, %v1303_v47  ;;  %v1414_v5 = vmax.f32 %v1374_v28, 0.0 }
 0x1eb   :  { %v1306_v16 = vpop.f32.mrf.mxu0 }
 0x1ec   :  { %v1378_v17 = vadd.f32 %v1377_v29, %v1305_v23  ;;  %v1307_v24 = vadd.f32 %v1306_v16, %v2748_v0  ;;  %v1379_v60 = vpop.f32.mrf.mxu1  ;;  %v1415_v32 = vmax.f32 %v1376_v26, 0.0 }
 0x1ed   :  { %v1310_v15 = vpop.f32.mrf.mxu0 }
 0x1ee   :  { %v1380_v62 = vadd.f32 %v1379_v60, %v1307_v24  ;;  %v1383_v2 = vpop.f32.mrf.mxu1  ;;  %v1418_v61 = vmax.f32 %v1378_v17, 0.0  ;;  %v1311_v8 = vadd.f32 %v1310_v15, %v2753_v18 }
 0x1ef   :  { %v1312_v63 = vpop.f32.mrf.mxu0 }
 0x1f0   :  { %v1419_v33 = vmax.f32 %v1380_v62, 0.0  ;;  %v1313_v3 = vadd.f32 %v1312_v63, %v2748_v0  ;;  %v1385_v4 = vpop.f32.mrf.mxu1  ;;  %v1446_v13 = vpack.c.bf16 %v1418_v61, %v1414_v5  ;;  %v1384_v22 = vadd.f32 %v1383_v2, %v1311_v8 }
 0x1f1   :  { %v1314_v9 = vpop.f32.mrf.mxu0 }
 0x1f2   :  { %v1447_v10 = vpack.c.bf16 %v1419_v33, %v1415_v32  ;;  %v1315_v11 = vadd.f32 %v1314_v9, %v2753_v18  ;;  %v1387_v12 = vpop.f32.mrf.mxu1  ;;  %v1386_v19 = vadd.f32 %v1385_v4, %v1313_v3  ;;  %v1422_v27 = vmax.f32 %v1384_v22, 0.0 }
 0x1f3   :  { %v1316_v14 = vpop.f32.mrf.mxu0 }
 0x1f4   :  { %v1388_v20 = vadd.f32 %v1387_v12, %v1315_v11  ;;  %v1317_v1 = vadd.f32 %v1316_v14, %v2748_v0  ;;  %v1389_v21 = vpop.f32.mrf.mxu1  ;;  %1820 = vmatprep.mubr.bf16.mxu1 %v1447_v10  ;;  %v1423_v25 = vmax.f32 %v1386_v19, 0.0 }
 0x1f5   :  { %v1320_v30 = vpop.f32.mrf.mxu0  ;;  %1821 = vmatmul.mubr.bf16.vlgmr.msra.gmra.mxu1 %v1446_v13 }
 0x1f6   :  { %v1390_v31 = vadd.f32 %v1389_v21, %v1317_v1  ;;  %v1393_v36 = vpop.f32.mrf.mxu1  ;;  %v1426_v37 = vmax.f32 %v1388_v20, 0.0  ;;  %v1321_v44 = vadd.f32 %v1320_v30, %v2753_v18  ;;  %v2011_v1 = vld [vmem:[%s2812_s6] ss:$0 sm:$0xff] }
 0x1f7   :  { %v1322_v38 = vpop.f32.mrf.mxu0 }
 0x1f8   :  { %v1427_v39 = vmax.f32 %v1390_v31, 0.0  ;;  %v1323_v42 = vadd.f32 %v1322_v38, %v2748_v0  ;;  %v1395_v43 = vpop.f32.mrf.mxu1  ;;  %v1450_v51 = vpack.c.bf16 %v1426_v37, %v1422_v27  ;;  %v1394_v35 = vadd.f32 %v1393_v36, %v1321_v44 }
 0x1f9   :  { %v1324_v45 = vpop.f32.mrf.mxu0 }
 0x1fa   :  { %v1451_v46 = vpack.c.bf16 %v1427_v39, %v1423_v25  ;;  %v1325_v49 = vadd.f32 %v1324_v45, %v2753_v18  ;;  %v1397_v50 = vpop.f32.mrf.mxu1  ;;  %v1396_v53 = vadd.f32 %v1395_v43, %v1323_v42  ;;  %v1430_v41 = vmax.f32 %v1394_v35, 0.0 }
 0x1fb   :  { %v1326_v52 = vpop.f32.mrf.mxu0 }
 0x1fc   :  { %v1398_v54 = vadd.f32 %v1397_v50, %v1325_v49  ;;  %v1327_v55 = vadd.f32 %v1326_v52, %v2748_v0  ;;  %v1399_v34 = vpop.f32.mrf.mxu1  ;;  %1828 = vmatprep.mubr.bf16.mxu1 %v1451_v46  ;;  %v1431_v7 = vmax.f32 %v1396_v53, 0.0 }
 0x1fd   :  { %v1330_v56 = vpop.f32.mrf.mxu0  ;;  %1829 = vmatmul.mubr.bf16.gmra.mxu1 %v1450_v51 }
 0x1fe   :  { %v1400_v57 = vadd.f32 %v1399_v34, %v1327_v55  ;;  %v1403_v58 = vpop.f32.mrf.mxu1  ;;  %v1434_v59 = vmax.f32 %v1398_v54, 0.0  ;;  %v1331_v23 = vadd.f32 %v1330_v56, %v2753_v18 }
 0x1ff   :  { %v1332_v6 = vpop.f32.mrf.mxu0 }
 0x200   :  { %v1435_v47 = vmax.f32 %v1400_v57, 0.0  ;;  %v1333_v48 = vadd.f32 %v1332_v6, %v2748_v0  ;;  %v1405_v40 = vpop.f32.mrf.mxu1  ;;  %v1454_v24 = vpack.c.bf16 %v1434_v59, %v1430_v41  ;;  %v1404_v2 = vadd.f32 %v1403_v58, %v1331_v23 }
 0x201   :  { %v1334_v29 = vpop.f32.mrf.mxu0 }
 0x202   :  { %v1455_v16 = vpack.c.bf16 %v1435_v47, %v1431_v7  ;;  %v1335_v26 = vadd.f32 %v1334_v29, %v2753_v18  ;;  %v1407_v17 = vpop.f32.mrf.mxu1  ;;  %v1406_v28 = vadd.f32 %v1405_v40, %v1333_v48  ;;  %v1438_v4 = vmax.f32 %v1404_v2, 0.0 }
 0x203   :  { %v1336_v60 = vpop.f32.mrf.mxu0 }
 0x204   :  { %v1408_v15 = vadd.f32 %v1407_v17, %v1335_v26  ;;  %v1337_v62 = vadd.f32 %v1336_v60, %v2748_v0  ;;  %1836 = vmatprep.mubr.bf16.mxu1 %v1455_v16  ;;  %v1409_v61 = vpop.f32.mrf.mxu1  ;;  %v1439_v33 = vmax.f32 %v1406_v28, 0.0 }
 0x205   :  { %1837 = vmatmul.mubr.bf16.gmra.mxu1 %v1454_v24 }
 0x206   :  { %v1410_v63 = vadd.f32 %v1409_v61, %v1337_v62  ;;  %v1442_v32 = vmax.f32 %v1408_v15, 0.0 }
 0x208   :  { %v1443_v3 = vmax.f32 %v1410_v63, 0.0  ;;  %v1458_v8 = vpack.c.bf16 %v1442_v32, %v1438_v4 }
 0x20a   :  { %v1459_v5 = vpack.c.bf16 %v1443_v3, %v1439_v33 }
 0x20c   :  { %1844 = vmatprep.mubr.bf16.mxu1 %v1459_v5 }
 0x20d   :  { %1845 = vmatmul.mubr.bf16.gmra.mxu1 %v1458_v8 }
 0x275   :  { %v2060_v18 = vpop.f32.mrf.mxu0 }
 0x277   :  { %v2061_v9 = vpop.f32.mrf.mxu0 }
 0x278   :  { %v2062_v20 = vadd.f32 %v2061_v9, %v2060_v18 }
 0x279   :  { %v2063_v10 = vpop.f32.mrf.mxu0 }
 0x27a   :  { %v1758_v31 = vadd.f32 %v2062_v20, %v2011_v1 }
 0x27b   :  { %v2064_v11 = vpop.f32.mrf.mxu0 }
 0x27c   :  { %v2065_v36 = vadd.f32 %v2064_v11, %v2063_v10 }
 0x27d   :  { %v2066_v12 = vpop.f32.mrf.mxu0 }
 0x27e   :  { %v1761_v43 = vadd.f32 %v2065_v36, %v2011_v1 }
 0x27f   :  { %v2067_v13 = vpop.f32.mrf.mxu0 }
 0x280   :  { %v2068_v27 = vadd.f32 %v2067_v13, %v2066_v12 }
 0x281   :  { %v2069_v0 = vpop.f32.mrf.mxu0 }
 0x282   :  { %v1766_v51 = vadd.f32 %v2068_v27, %v2011_v1 }
 0x283   :  { %v2070_v14 = vpop.f32.mrf.mxu0 }
 0x284   :  { %v2071_v52 = vadd.f32 %v2070_v14, %v2069_v0 }
 0x285   :  { %v2072_v19 = vpop.f32.mrf.mxu0 }
 0x286   :  { %v1769_v56 = vadd.f32 %v2071_v52, %v2011_v1 }
 0x287   :  { %v2073_v21 = vpop.f32.mrf.mxu0 }
 0x288   :  { %v2074_v57 = vadd.f32 %v2073_v21, %v2072_v19 }
 0x289   :  { %v2075_v38 = vpop.f32.mrf.mxu0 }
 0x28a   :  { %v1774_v48 = vadd.f32 %v2074_v57, %v2011_v1 }
 0x28b   :  { %v2076_v45 = vpop.f32.mrf.mxu0 }
 0x28c   :  { %v2077_v40 = vadd.f32 %v2076_v45, %v2075_v38 }
 0x28d   :  { %v2078_v54 = vpop.f32.mrf.mxu0 }
 0x28e   :  { %v1777_v17 = vadd.f32 %v2077_v40, %v2011_v1 }
 0x28f   :  { %v2079_v59 = vpop.f32.mrf.mxu0 }
 0x290   :  { %v2080_v24 = vadd.f32 %v2079_v59, %v2078_v54 }
 0x291   :  { %v2081_v23 = vpop.f32.mrf.mxu0 }
 0x292   :  { %v1782_v61 = vadd.f32 %v2080_v24, %v2011_v1 }
 0x293   :  { %v2082_v28 = vpop.f32.mrf.mxu0 }
 0x294   :  { %v2083_v63 = vadd.f32 %v2082_v28, %v2081_v23 }
 0x296   :  { %v1785_v5 = vadd.f32 %v2083_v63, %v2011_v1 }
 0x2b5   :  { %v2100_v22 = vpop.f32.mrf.mxu1 }
 0x2b7   :  { %v2101_v30 = vpop.f32.mrf.mxu1 }
 0x2b8   :  { %v2102_v37 = vadd.f32 %v2101_v30, %v2100_v22 }
 0x2b9   :  { %v2103_v25 = vpop.f32.mrf.mxu1 }
 0x2ba   :  { %v1823_v39 = vadd.f32 %v2102_v37, %v1758_v31 }
 0x2bb   :  { %v2104_v42 = vpop.f32.mrf.mxu1 }
 0x2bc   :  { %1854 = vst.msk [vmem:[%s2813_s7] sm:$0xff] %vm1853_vm1, %v1823_v39  ;;  %v2105_v44 = vadd.f32 %v2104_v42, %v2103_v25 }
 0x2bd   :  { %v2106_v46 = vpop.f32.mrf.mxu1 }
 0x2be   :  { %v1826_v49 = vadd.f32 %v2105_v44, %v1761_v43 }
 0x2bf   :  { %v2107_v50 = vpop.f32.mrf.mxu1 }
 0x2c0   :  { %1855 = vst.msk [vmem:[%s2813_s7 + $0x8] sm:$0xff] %vm1853_vm1, %v1826_v49  ;;  %v2108_v53 = vadd.f32 %v2107_v50, %v2106_v46 }
 0x2c1   :  { %v2109_v55 = vpop.f32.mrf.mxu1 }
 0x2c2   :  { %v1831_v34 = vadd.f32 %v2108_v53, %v1766_v51 }
 0x2c3   :  { %v2110_v35 = vpop.f32.mrf.mxu1 }
 0x2c4   :  { %1856 = vst.msk [vmem:[%s2813_s7 + $0x10] sm:$0xff] %vm1853_vm1, %v1831_v34  ;;  %v2111_v58 = vadd.f32 %v2110_v35, %v2109_v55 }
 0x2c5   :  { %v2112_v6 = vpop.f32.mrf.mxu1 }
 0x2c6   :  { %v1834_v7 = vadd.f32 %v2111_v58, %v1769_v56 }
 0x2c7   :  { %v2113_v47 = vpop.f32.mrf.mxu1 }
 0x2c8   :  { %1857 = vst.msk [vmem:[%s2813_s7 + $0x18] sm:$0xff] %vm1853_vm1, %v1834_v7  ;;  %v2114_v41 = vadd.f32 %v2113_v47, %v2112_v6 }
 0x2c9   :  { %v2115_v29 = vpop.f32.mrf.mxu1 }
 0x2ca   :  { %v1839_v16 = vadd.f32 %v2114_v41, %v1774_v48 }
 0x2cb   :  { %v2116_v26 = vpop.f32.mrf.mxu1 }
 0x2cc   :  { %1858 = vst.msk [vmem:[%s2813_s7 + $0x20] sm:$0xff] %vm1853_vm1, %v1839_v16  ;;  %v2117_v60 = vadd.f32 %v2116_v26, %v2115_v29 }
 0x2cd   :  { %v2118_v15 = vpop.f32.mrf.mxu1 }
 0x2ce   :  { %v1842_v62 = vadd.f32 %v2117_v60, %v1777_v17 }
 0x2cf   :  { %v2119_v2 = vpop.f32.mrf.mxu1 }
 0x2d0   :  { %1859 = vst.msk [vmem:[%s2813_s7 + $0x28] sm:$0xff] %vm1853_vm1, %v1842_v62  ;;  %v2120_v32 = vadd.f32 %v2119_v2, %v2118_v15 }
 0x2d1   :  { %v2121_v33 = vpop.f32.mrf.mxu1 }
 0x2d2   :  { %v1847_v3 = vadd.f32 %v2120_v32, %v1782_v61 }
 0x2d3   :  { %v2122_v4 = vpop.f32.mrf.mxu1 }
 0x2d4   :  { %1860 = vst.msk [vmem:[%s2813_s7 + $0x30] sm:$0xff] %vm1853_vm1, %v1847_v3  ;;  %v2123_v8 = vadd.f32 %v2122_v4, %v2121_v33 }
 0x2d6   :  { %v1850_v18 = vadd.f32 %v2123_v8, %v1785_v5 }
 0x2d8   :  { %1861 = vst.msk [vmem:[%s2813_s7 + $0x38] sm:$0xff] %vm1853_vm1, %v1850_v18 }
 0x2d9   :  { %1866 = vsyncpa [#allocation3], 1 }

</bundles_post_ra>
